<compile_context>
chip_gen: v6e
topology: v6e:2x2x1
jax: 0.10.0
libtpu: 0.0.40
codegen_flags: <defaults>
</compile_context>

<pallas_src>
import functools

import jax
import jax.numpy as jnp
from jax import lax
from jax.experimental import pallas as pl
from jax.experimental.pallas import tpu as pltpu

F32_EPS = float(jnp.finfo(jnp.float32).eps)   # torch clamp_probs eps (float32)


def _round_up(a, b):
    return (a + b - 1) // b * b


# ---------------------------------------------------------------------------
# Kernel 1: one-shot parameter normalization (independent of N).
#   input : raw params slab (C, D), D = sum(dims)
#   output: probs (C, D)  -- the module's `params` output (clamped softmaxes)
#           logp  (C, D)  -- torch Categorical log-prob table, already in the
#                            mixtures-on-sublanes layout kernel 2 gathers from
# Per-feature segments are handled with lane masks on the full (C, D) slab
# (robust lowering; negligible cost at small F*D).
# TODO(synk): for large F or D, switch to static per-segment ref slices or a
# padded (F, C, d_max) + fori_loop layout to avoid F-fold full-width passes.
# ---------------------------------------------------------------------------
def _params_kernel(dims, p_ref, probs_ref, logp_ref):
    C, D = probs_ref.shape
    p_all = p_ref[...]                                     # (C, D) raw params
    col = lax.broadcasted_iota(jnp.int32, (C, D), 1)       # lane index

    probs = jnp.zeros((C, D), jnp.float32)
    logp = jnp.zeros((C, D), jnp.float32)

    off = 0
    for d in dims:                                         # static unroll (F small)
        m = (col >= off) & (col < off + d)                 # (C, D) segment mask
        # exp_normalize_trick: softmax over the segment, clamp to [1e-8, 1]
        rmax = jnp.max(jnp.where(m, p_all, -jnp.inf), axis=-1, keepdims=True)
        e = jnp.where(m, jnp.exp(jnp.where(m, p_all - rmax, 0.0)), 0.0)
        p = jnp.clip(e / jnp.sum(e, axis=-1, keepdims=True), 1e-8, 1.0)
        p = jnp.where(m, p, 0.0)
        probs = jnp.where(m, p, probs)
        # torch Categorical(probs=p): renormalize + clamp_probs + log
        pn = p / jnp.sum(p, axis=-1, keepdims=True)
        lp = jnp.log(jnp.clip(pn, F32_EPS, 1.0 - F32_EPS))
        logp = jnp.where(m, lp, logp)
        off += d

    probs_ref[...] = probs
    logp_ref[...] = logp


# ---------------------------------------------------------------------------
# Kernel 2: per-node log-likelihoods, tiled over N ("parallel" grid axis).
# Transposed working layout: N on lanes, C on sublanes.
#   inputs : x (F, TN) int32, mw (C, TN) f32, logp (C, D) f32 (resident)
#   output : (OUT_ROWS, TN) f32 tile: rows 0..C-1 = llc, row C = ll, rest zero
# ---------------------------------------------------------------------------
def _likelihood_kernel(dims, x_ref, mw_ref, logp_ref, out_ref):
    C, TN = mw_ref.shape
    out_rows = out_ref.shape[0]
    logp = logp_ref[...]                                   # (C, D), tiny

    # mixture log-weights; log_softmax(log q) == log q - log(sum q) exactly.
    mw = mw_ref[...]                                       # (C, TN)
    q = jnp.clip(mw / jnp.sum(mw, axis=0, keepdims=True), F32_EPS, 1.0 - F32_EPS)
    log_mix = jnp.log(q) - jnp.log(jnp.sum(q, axis=0, keepdims=True))   # (C, TN)

    llc = jnp.zeros((C, TN), jnp.float32)    # per-component log-lik accumulator
    ll = jnp.zeros((1, TN), jnp.float32)     # per-vertex log-lik accumulator

    off = 0
    for i, d in enumerate(dims):             # static unroll over features
        xi = x_ref[i:i + 1, :]               # (1, TN) int32 categories
        # exact VPU gather: comp[c, n] = logp[c, off + x[n, i]]
        # (x outside [0, d) leaves comp at 0 -- valid inputs assumed)
        # TODO(synk): for d >~ 32 use a one-hot MXU matmul gather instead.
        comp = jnp.zeros((C, TN), jnp.float32)
        for k in range(d):
            hit = jnp.broadcast_to(xi == k, (C, TN))
            colv = jnp.broadcast_to(logp[:, off + k:off + k + 1], (C, TN))
            comp = jnp.where(hit, colv, comp)
        llc = llc + comp

        # MixtureSameFamily.log_prob: logsumexp over components (sublane axis)
        s = comp + log_mix
        smax = jnp.max(s, axis=0, keepdims=True)
        ll = ll + smax + jnp.log(jnp.sum(jnp.exp(s - smax), axis=0, keepdims=True))
        off += d

    # compact lane-dense output (unmasked 128-lane stores, sublane-masked rows)
    out_ref[0:C, :] = llc
    out_ref[C:C + 1, :] = ll
    if out_rows > C + 1:
        out_ref[C + 1:out_rows, :] = jnp.zeros((out_rows - C - 1, TN), jnp.float32)


def gspn_multi_categorical_emission(x, mixture_weights, params_list, dims, *,
                                    tile_n=2048):
    """Returns (params (C, D), ll (N,), ll_components (N, C), None)."""
    dims = tuple(int(d) for d in dims)
    assert all(d >= 1 for d in dims), "every categorical feature needs >= 1 category"
    N, F = x.shape
    C = mixture_weights.shape[1]
    D = sum(dims)
    assert F == len(dims)

    # fused lane-dense raw-parameter slab
    params_all = jnp.concatenate(
        [p.astype(jnp.float32) for p in params_list], axis=1)          # (C, D)

    # --- kernel 1: one-shot parameter normalization -------------------------
    probs_all, logp = pl.pallas_call(
        functools.partial(_params_kernel, dims),
        grid=(1,),
        out_shape=(jax.ShapeDtypeStruct((C, D), jnp.float32),
                   jax.ShapeDtypeStruct((C, D), jnp.float32)),
        in_specs=[pl.BlockSpec((C, D), lambda i: (0, 0))],
        out_specs=(pl.BlockSpec((C, D), lambda i: (0, 0)),
                   pl.BlockSpec((C, D), lambda i: (0, 0))),
        compiler_params=pltpu.CompilerParams(
            dimension_semantics=("arbitrary",)),
    )(params_all)

    # --- kernel 2: N-tiled likelihoods (N on lanes, C on sublanes) ----------
    tile_n = max(128, _round_up(int(tile_n), 128))
    # cap TN so the grid has >= 2 steps whenever possible (v7x: both TCs run)
    TN = min(tile_n, _round_up((N + 1) // 2, 128))
    N_pad = _round_up(N, TN)
    OUT_ROWS = _round_up(C + 1, 8)

    # transposed, lane-dense inputs (cheap XLA transposes); padded lanes use
    # category 0 / weight 1.0 so the (discarded) padding never produces NaNs.
    x_t = x.astype(jnp.int32).T                                         # (F, N)
    mw_t = mixture_weights.astype(jnp.float32).T                        # (C, N)
    if N_pad != N:
        x_t = jnp.pad(x_t, ((0, 0), (0, N_pad - N)))
        mw_t = jnp.pad(mw_t, ((0, 0), (0, N_pad - N)), constant_values=1.0)

    out = pl.pallas_call(
        functools.partial(_likelihood_kernel, dims),
        grid=(N_pad // TN,),
        out_shape=jax.ShapeDtypeStruct((OUT_ROWS, N_pad), jnp.float32),
        in_specs=[pl.BlockSpec((F, TN), lambda n: (0, n)),
                  pl.BlockSpec((C, TN), lambda n: (0, n)),
                  pl.BlockSpec((C, D), lambda n: (0, 0))],   # resident table
        out_specs=pl.BlockSpec((OUT_ROWS, TN), lambda n: (0, n)),
        compiler_params=pltpu.CompilerParams(
            dimension_semantics=("parallel",)),
    )(x_t, mw_t, logp)

    llc = out[:C, :N].T                                                 # (N, C)
    ll = out[C, :N]                                                     # (N,)
    return probs_all, ll, llc, None     # impute() returns None


def _reference(x, mw, params_list, dims):
    """Plain-JAX reference mirroring the PyTorch forward."""
    mw_norm = mw / jnp.sum(mw, axis=-1, keepdims=True)
    mix_logits = jnp.log(jnp.clip(mw_norm, F32_EPS, 1.0 - F32_EPS))
    log_mix = jax.nn.log_softmax(mix_logits, axis=-1)
    ll = 0.0
    llc = 0.0
    probs_out = []
    for i, d in enumerate(dims):
        p = jax.nn.softmax(params_list[i], axis=-1)
        p = jnp.clip(p, 1e-8, 1.0)
        probs_out.append(p)
        p_norm = p / jnp.sum(p, axis=-1, keepdims=True)
        logp = jnp.log(jnp.clip(p_norm, F32_EPS, 1.0 - F32_EPS))  # (C, d)
        comp = logp.T[x[:, i]]                                    # (N, C)
        llc = llc + comp
        ll = ll + jax.scipy.special.logsumexp(comp + log_mix, axis=-1)
    return jnp.concatenate(probs_out, axis=1), ll, llc


if __name__ == "__main__":
    key = jax.random.PRNGKey(0)
    N = 8             # number of nodes / samples
    C = 4             # num_mixtures
    H = 32            # num_hidden_neurons (config only; unused by this emission)
    dims = (3, 5, 4)  # dim_categorical_features

    k_params, k_x, k_mw = jax.random.split(key, 3)

    # parameters: uniform_[0,1) init of shape (num_mixtures, d) per feature
    pkeys = jax.random.split(k_params, len(dims))
    params_list = [
        jax.random.uniform(pk, (C, d), dtype=jnp.float32)
        for pk, d in zip(pkeys, dims)
    ]

    # x[:, i] is an integer category in [0, dims[i])
    xkeys = jax.random.split(k_x, len(dims))
    x = jnp.concatenate(
        [jax.random.randint(xk, (N, 1), 0, d, dtype=jnp.int32)
         for xk, d in zip(xkeys, dims)],
        axis=1,
    )

    # per-node mixture weights (positive, sum to 1)
    mw = jax.nn.softmax(jax.random.normal(k_mw, (N, C), dtype=jnp.float32), axis=-1)

    params_out, ll, llc, imputed = gspn_multi_categorical_emission(
        x, mw, params_list, dims
    )
    jax.block_until_ready((params_out, ll, llc))

    # numerical sanity check against plain-JAX reference
    ref_params, ref_ll, ref_llc = _reference(x, mw, params_list, dims)
    assert params_out.shape == (C, sum(dims))
    assert ll.shape == (N,)
    assert llc.shape == (N, C)
    assert imputed is None
    assert jnp.allclose(params_out, ref_params, atol=1e-5, rtol=1e-5)
    assert jnp.allclose(ll, ref_ll, atol=1e-5, rtol=1e-5)
    assert jnp.allclose(llc, ref_llc, atol=1e-5, rtol=1e-5)

    print("KERNEL_OK")
</pallas_src>

<mosaic_0001>
module attributes {stable_mosaic.version = 11 : i64} {
  func.func @_params_kernel(%arg0: i32, %arg1: memref<4x12xf32, #tpu.memory_space<vmem>>, %arg2: memref<4x12xf32, #tpu.memory_space<vmem>>, %arg3: memref<4x12xf32, #tpu.memory_space<vmem>>) attributes {dimension_semantics = [#tpu.dimension_semantics<arbitrary>], iteration_bounds = array<i64: 1>, scalar_prefetch = 0 : i64, scratch_operands = 0 : i64, tpu.core_type = #tpu.core_type<tc>, window_params = [{pipeline_mode = #tpu.pipeline_mode<synchronous>, transform_indices = @transform_0, window_bounds = array<i64: 4, 12>}, {pipeline_mode = #tpu.pipeline_mode<synchronous>, transform_indices = @transform_1, window_bounds = array<i64: 4, 12>}, {pipeline_mode = #tpu.pipeline_mode<synchronous>, transform_indices = @transform_2, window_bounds = array<i64: 4, 12>}]} {
    %c0 = arith.constant 0 : index
    %c0_0 = arith.constant 0 : index
    %0 = vector.load %arg1[%c0, %c0_0] : memref<4x12xf32, #tpu.memory_space<vmem>>, vector<4x12xf32>
    %1 = tpu.iota {dimensions = array<i32: 1>} : vector<4x12xi32>
    %cst = arith.constant 0.000000e+00 : f32
    %2 = vector.broadcast %cst : f32 to vector<4x12xf32>
    %cst_1 = arith.constant 0.000000e+00 : f32
    %3 = vector.broadcast %cst_1 : f32 to vector<4x12xf32>
    %c0_i32 = arith.constant 0 : i32
    %4 = vector.broadcast %c0_i32 : i32 to vector<4x12xi32>
    %5 = arith.cmpi sge, %1, %4 : vector<4x12xi32>
    %c3_i32 = arith.constant 3 : i32
    %6 = vector.broadcast %c3_i32 : i32 to vector<4x12xi32>
    %7 = arith.cmpi slt, %1, %6 : vector<4x12xi32>
    %8 = arith.andi %5, %7 : vector<4x12xi1>
    %cst_2 = arith.constant 0xFF800000 : f32
    %9 = vector.broadcast %cst_2 : f32 to vector<4x12xf32>
    %10 = arith.select %8, %0, %9 : vector<4x12xi1>, vector<4x12xf32>
    %cst_3 = arith.constant dense<0xFF800000> : vector<4xf32>
    %11 = vector.multi_reduction <maximumf>, %10, %cst_3 [1] : vector<4x12xf32> to vector<4xf32>
    %12 = vector.shape_cast %11 : vector<4xf32> to vector<4x1xf32>
    %13 = vector.broadcast %12 : vector<4x1xf32> to vector<4x12xf32>
    %14 = arith.subf %0, %13 : vector<4x12xf32>
    %cst_4 = arith.constant 0.000000e+00 : f32
    %15 = vector.broadcast %cst_4 : f32 to vector<4x12xf32>
    %16 = arith.select %8, %14, %15 : vector<4x12xi1>, vector<4x12xf32>
    %17 = math.exp %16 : vector<4x12xf32>
    %cst_5 = arith.constant 0.000000e+00 : f32
    %18 = vector.broadcast %cst_5 : f32 to vector<4x12xf32>
    %19 = arith.select %8, %17, %18 : vector<4x12xi1>, vector<4x12xf32>
    %cst_6 = arith.constant dense<0.000000e+00> : vector<4xf32>
    %20 = vector.multi_reduction <add>, %19, %cst_6 [1] : vector<4x12xf32> to vector<4xf32>
    %21 = vector.shape_cast %20 : vector<4xf32> to vector<4x1xf32>
    %22 = vector.broadcast %21 : vector<4x1xf32> to vector<4x12xf32>
    %23 = arith.divf %19, %22 : vector<4x12xf32>
    %cst_7 = arith.constant 9.99999993E-9 : f32
    %cst_8 = arith.constant 1.000000e+00 : f32
    %24 = vector.broadcast %cst_7 : f32 to vector<4x12xf32>
    %25 = arith.maximumf %24, %23 : vector<4x12xf32>
    %26 = vector.broadcast %cst_8 : f32 to vector<4x12xf32>
    %27 = arith.minimumf %26, %25 : vector<4x12xf32>
    %cst_9 = arith.constant 0.000000e+00 : f32
    %28 = vector.broadcast %cst_9 : f32 to vector<4x12xf32>
    %29 = arith.select %8, %27, %28 : vector<4x12xi1>, vector<4x12xf32>
    %30 = arith.select %8, %29, %2 : vector<4x12xi1>, vector<4x12xf32>
    %cst_10 = arith.constant dense<0.000000e+00> : vector<4xf32>
    %31 = vector.multi_reduction <add>, %29, %cst_10 [1] : vector<4x12xf32> to vector<4xf32>
    %32 = vector.shape_cast %31 : vector<4xf32> to vector<4x1xf32>
    %33 = vector.broadcast %32 : vector<4x1xf32> to vector<4x12xf32>
    %34 = arith.divf %29, %33 : vector<4x12xf32>
    %cst_11 = arith.constant 1.1920929E-7 : f32
    %cst_12 = arith.constant 0.99999988 : f32
    %35 = vector.broadcast %cst_11 : f32 to vector<4x12xf32>
    %36 = arith.maximumf %35, %34 : vector<4x12xf32>
    %37 = vector.broadcast %cst_12 : f32 to vector<4x12xf32>
    %38 = arith.minimumf %37, %36 : vector<4x12xf32>
    %39 = math.log %38 : vector<4x12xf32>
    %40 = arith.select %8, %39, %3 : vector<4x12xi1>, vector<4x12xf32>
    %c3_i32_13 = arith.constant 3 : i32
    %41 = vector.broadcast %c3_i32_13 : i32 to vector<4x12xi32>
    %42 = arith.cmpi sge, %1, %41 : vector<4x12xi32>
    %c8_i32 = arith.constant 8 : i32
    %43 = vector.broadcast %c8_i32 : i32 to vector<4x12xi32>
    %44 = arith.cmpi slt, %1, %43 : vector<4x12xi32>
    %45 = arith.andi %42, %44 : vector<4x12xi1>
    %cst_14 = arith.constant 0xFF800000 : f32
    %46 = vector.broadcast %cst_14 : f32 to vector<4x12xf32>
    %47 = arith.select %45, %0, %46 : vector<4x12xi1>, vector<4x12xf32>
    %cst_15 = arith.constant dense<0xFF800000> : vector<4xf32>
    %48 = vector.multi_reduction <maximumf>, %47, %cst_15 [1] : vector<4x12xf32> to vector<4xf32>
    %49 = vector.shape_cast %48 : vector<4xf32> to vector<4x1xf32>
    %50 = vector.broadcast %49 : vector<4x1xf32> to vector<4x12xf32>
    %51 = arith.subf %0, %50 : vector<4x12xf32>
    %cst_16 = arith.constant 0.000000e+00 : f32
    %52 = vector.broadcast %cst_16 : f32 to vector<4x12xf32>
    %53 = arith.select %45, %51, %52 : vector<4x12xi1>, vector<4x12xf32>
    %54 = math.exp %53 : vector<4x12xf32>
    %cst_17 = arith.constant 0.000000e+00 : f32
    %55 = vector.broadcast %cst_17 : f32 to vector<4x12xf32>
    %56 = arith.select %45, %54, %55 : vector<4x12xi1>, vector<4x12xf32>
    %cst_18 = arith.constant dense<0.000000e+00> : vector<4xf32>
    %57 = vector.multi_reduction <add>, %56, %cst_18 [1] : vector<4x12xf32> to vector<4xf32>
    %58 = vector.shape_cast %57 : vector<4xf32> to vector<4x1xf32>
    %59 = vector.broadcast %58 : vector<4x1xf32> to vector<4x12xf32>
    %60 = arith.divf %56, %59 : vector<4x12xf32>
    %cst_19 = arith.constant 9.99999993E-9 : f32
    %cst_20 = arith.constant 1.000000e+00 : f32
    %61 = vector.broadcast %cst_19 : f32 to vector<4x12xf32>
    %62 = arith.maximumf %61, %60 : vector<4x12xf32>
    %63 = vector.broadcast %cst_20 : f32 to vector<4x12xf32>
    %64 = arith.minimumf %63, %62 : vector<4x12xf32>
    %cst_21 = arith.constant 0.000000e+00 : f32
    %65 = vector.broadcast %cst_21 : f32 to vector<4x12xf32>
    %66 = arith.select %45, %64, %65 : vector<4x12xi1>, vector<4x12xf32>
    %67 = arith.select %45, %66, %30 : vector<4x12xi1>, vector<4x12xf32>
    %cst_22 = arith.constant dense<0.000000e+00> : vector<4xf32>
    %68 = vector.multi_reduction <add>, %66, %cst_22 [1] : vector<4x12xf32> to vector<4xf32>
    %69 = vector.shape_cast %68 : vector<4xf32> to vector<4x1xf32>
    %70 = vector.broadcast %69 : vector<4x1xf32> to vector<4x12xf32>
    %71 = arith.divf %66, %70 : vector<4x12xf32>
    %cst_23 = arith.constant 1.1920929E-7 : f32
    %cst_24 = arith.constant 0.99999988 : f32
    %72 = vector.broadcast %cst_23 : f32 to vector<4x12xf32>
    %73 = arith.maximumf %72, %71 : vector<4x12xf32>
    %74 = vector.broadcast %cst_24 : f32 to vector<4x12xf32>
    %75 = arith.minimumf %74, %73 : vector<4x12xf32>
    %76 = math.log %75 : vector<4x12xf32>
    %77 = arith.select %45, %76, %40 : vector<4x12xi1>, vector<4x12xf32>
    %c8_i32_25 = arith.constant 8 : i32
    %78 = vector.broadcast %c8_i32_25 : i32 to vector<4x12xi32>
    %79 = arith.cmpi sge, %1, %78 : vector<4x12xi32>
    %c12_i32 = arith.constant 12 : i32
    %80 = vector.broadcast %c12_i32 : i32 to vector<4x12xi32>
    %81 = arith.cmpi slt, %1, %80 : vector<4x12xi32>
    %82 = arith.andi %79, %81 : vector<4x12xi1>
    %cst_26 = arith.constant 0xFF800000 : f32
    %83 = vector.broadcast %cst_26 : f32 to vector<4x12xf32>
    %84 = arith.select %82, %0, %83 : vector<4x12xi1>, vector<4x12xf32>
    %cst_27 = arith.constant dense<0xFF800000> : vector<4xf32>
    %85 = vector.multi_reduction <maximumf>, %84, %cst_27 [1] : vector<4x12xf32> to vector<4xf32>
    %86 = vector.shape_cast %85 : vector<4xf32> to vector<4x1xf32>
    %87 = vector.broadcast %86 : vector<4x1xf32> to vector<4x12xf32>
    %88 = arith.subf %0, %87 : vector<4x12xf32>
    %cst_28 = arith.constant 0.000000e+00 : f32
    %89 = vector.broadcast %cst_28 : f32 to vector<4x12xf32>
    %90 = arith.select %82, %88, %89 : vector<4x12xi1>, vector<4x12xf32>
    %91 = math.exp %90 : vector<4x12xf32>
    %cst_29 = arith.constant 0.000000e+00 : f32
    %92 = vector.broadcast %cst_29 : f32 to vector<4x12xf32>
    %93 = arith.select %82, %91, %92 : vector<4x12xi1>, vector<4x12xf32>
    %cst_30 = arith.constant dense<0.000000e+00> : vector<4xf32>
    %94 = vector.multi_reduction <add>, %93, %cst_30 [1] : vector<4x12xf32> to vector<4xf32>
    %95 = vector.shape_cast %94 : vector<4xf32> to vector<4x1xf32>
    %96 = vector.broadcast %95 : vector<4x1xf32> to vector<4x12xf32>
    %97 = arith.divf %93, %96 : vector<4x12xf32>
    %cst_31 = arith.constant 9.99999993E-9 : f32
    %cst_32 = arith.constant 1.000000e+00 : f32
    %98 = vector.broadcast %cst_31 : f32 to vector<4x12xf32>
    %99 = arith.maximumf %98, %97 : vector<4x12xf32>
    %100 = vector.broadcast %cst_32 : f32 to vector<4x12xf32>
    %101 = arith.minimumf %100, %99 : vector<4x12xf32>
    %cst_33 = arith.constant 0.000000e+00 : f32
    %102 = vector.broadcast %cst_33 : f32 to vector<4x12xf32>
    %103 = arith.select %82, %101, %102 : vector<4x12xi1>, vector<4x12xf32>
    %104 = arith.select %82, %103, %67 : vector<4x12xi1>, vector<4x12xf32>
    %cst_34 = arith.constant dense<0.000000e+00> : vector<4xf32>
    %105 = vector.multi_reduction <add>, %103, %cst_34 [1] : vector<4x12xf32> to vector<4xf32>
    %106 = vector.shape_cast %105 : vector<4xf32> to vector<4x1xf32>
    %107 = vector.broadcast %106 : vector<4x1xf32> to vector<4x12xf32>
    %108 = arith.divf %103, %107 : vector<4x12xf32>
    %cst_35 = arith.constant 1.1920929E-7 : f32
    %cst_36 = arith.constant 0.99999988 : f32
    %109 = vector.broadcast %cst_35 : f32 to vector<4x12xf32>
    %110 = arith.maximumf %109, %108 : vector<4x12xf32>
    %111 = vector.broadcast %cst_36 : f32 to vector<4x12xf32>
    %112 = arith.minimumf %111, %110 : vector<4x12xf32>
    %113 = math.log %112 : vector<4x12xf32>
    %114 = arith.select %82, %113, %77 : vector<4x12xi1>, vector<4x12xf32>
    %c0_37 = arith.constant 0 : index
    %c0_38 = arith.constant 0 : index
    %115 = vector.load %arg2[%c0_37, %c0_38] : memref<4x12xf32, #tpu.memory_space<vmem>>, vector<4x12xf32>
    tpu.vector_store %arg2[%c0_37, %c0_38], %104 {strides = array<i32>} : memref<4x12xf32, #tpu.memory_space<vmem>>, vector<4x12xf32>,
    %c0_39 = arith.constant 0 : index
    %c0_40 = arith.constant 0 : index
    %116 = vector.load %arg3[%c0_39, %c0_40] : memref<4x12xf32, #tpu.memory_space<vmem>>, vector<4x12xf32>
    tpu.vector_store %arg3[%c0_39, %c0_40], %114 {strides = array<i32>} : memref<4x12xf32, #tpu.memory_space<vmem>>, vector<4x12xf32>,
    return
  }
  func.func @transform_0(%arg0: i32) -> (i32, i32) {
    %c0_i32 = arith.constant 0 : i32
    %c0_i32_0 = arith.constant 0 : i32
    %c0_i32_1 = arith.constant 0 : i32
    return %c0_i32, %c0_i32_0 : i32, i32
  }
  func.func @transform_1(%arg0: i32) -> (i32, i32) {
    %c0_i32 = arith.constant 0 : i32
    %c0_i32_0 = arith.constant 0 : i32
    %c0_i32_1 = arith.constant 0 : i32
    return %c0_i32, %c0_i32_0 : i32, i32
  }
  func.func @transform_2(%arg0: i32) -> (i32, i32) {
    %c0_i32 = arith.constant 0 : i32
    %c0_i32_0 = arith.constant 0 : i32
    %c0_i32_1 = arith.constant 0 : i32
    return %c0_i32, %c0_i32_0 : i32, i32
  }
}

</mosaic_0001>

<bundles_post_ra>
// kernel: tpu_custom_call.1
= control target key start
LH: loop header
LB: loop body
LE: loop exit
PB: predicated region body
PF: predicated region fallthrough
CT: control target
= control target key end

     0   :  { %8 = vsyncpa [#allocation3], 0  ;;  %s331_s0 = inlined_call_operand.hbm [shape: f32[4,12], index: 0, kind: input, shape index: {}]   ;;  %s332_s1 = inlined_call_operand.hbm [shape: f32[4,12], index: 1, kind: output, shape index: {0}]   ;;  %s333_s2 = inlined_call_operand.hbm [shape: f32[4,12], index: 2, kind: output, shape index: {1}]  }
   0x1   :  { %9 = vsyncpa [#allocation4], 0 }
   0x2   :  { %10 = vsyncpa [#allocation7], 0  ;;  %s244_s9 = smov [#allocation2]  }
   0x3   :  { %s17_s10 = sshll.u32 %s244_s9, 4  ;;  %s18_s10 = int_to_ptr.vmem [resolvable:$true] %s17_s10 }
   0x4   :  { %s186_s11 = scalar_lea.vmem %s18_s10, 64  ;;  %p191_p1 = scmp.lt.s32.totalorder %s18_s10, %s18_s10 }
   0x5   :  { %p187_p0 = scmp.ne.s32.totalorder %s18_s10, %s186_s11  ;;  %p192_p2 = scmp.lt.s32.totalorder %s186_s11, %s186_s11 }
   0x7   :  { %p193_p3 = por %p192_p2, %p191_p1 }
   0x9   :  { %p194_p4 = pnand %p193_p3, %p187_p0 }
   0xb   :  { %197 = shalt.err (!%p194_p4)
}
   0xc   :  { %20 = dma.hbm_to_vmem [thread:$0]  %s331_s0, 64, %s18_s10, [#allocation3]  }
   0xd   :  { %238 = dma.done.wait [#allocation3], 64  }
   0xe   :  { %239 = vsyncadd [#allocation3], 4294967232  ;;  %v25_v0 = vlaneseq  ;;  %vm31_vm6 = vcmask 93184   ;;  %v24_v4 = vld [vmem:[#allocation2] sm:$0xf]  ;;  %s245_s0 = smov [#allocation5]  }
   0xf   :  { %s128_s14 = sshll.u32 %s245_s0, 4  ;;  %s129_s14 = int_to_ptr.vmem [resolvable:$true] %s128_s14 }
  0x10   :  { %v265_v1 = vand.u32 127, %v25_v0  ;;  %s198_s15 = scalar_lea.vmem %s129_s14, 64  ;;  %p203_p6 = scmp.lt.s32.totalorder %s129_s14, %s129_s14 }
  0x11   :  { %p199_p5 = scmp.ne.s32.totalorder %s129_s14, %s198_s15  ;;  %p204_p7 = scmp.lt.s32.totalorder %s198_s15, %s198_s15 }
  0x12   :  { %vm89_vm0 = vcmp.ge.s32.totalorder %v265_v1, 8  ;;  %vm90_vm1 = vcmp.lt.s32.totalorder %v265_v1, 12  ;;  %vm58_vm2 = vcmp.ge.s32.totalorder %v265_v1, 3  ;;  %vm28_vm3 = vcmp.lt.s32.totalorder %v265_v1, 3 }
  0x13   :  { %vm271_vm4 = vmand %vm89_vm0, %vm90_vm1  ;;  %vm59_vm5 = vcmp.lt.s32.totalorder %v265_v1, 8  ;;  %v30_v5 = vsel %vm28_vm3, %v24_v4, -inf  ;;  %p205_p8 = por %p204_p7, %p203_p6 }
  0x14   :  { %vm276_vm7 = vmand %vm58_vm2, %vm59_vm5  ;;  %v92_v6 = vsel %vm271_vm4, %v24_v4, -inf  ;;  %v32_v8 = vsel %vm31_vm6, %v30_v5, -inf }
  0x15   :  { %v61_v7 = vsel %vm276_vm7, %v24_v4, -inf  ;;  %v93_v9 = vsel %vm31_vm6, %v92_v6, -inf  ;;  %33 = vmax.xlane.f32.xlu0 %v32_v8  ;;  %p206_p9 = pnand %p205_p8, %p199_p5 }
  0x16   :  { %94 = vmax.xlane.f32.xlu1 %v93_v9  ;;  %v62_v10 = vsel %vm31_vm6, %v61_v7, -inf }
  0x19   :  { %63 = vmax.xlane.f32.xlu0 %v62_v10 }
  0x9e   :  { %v34_v11 = vpop.xlane.xlu0 %33 }
  0x9f   :  { %v95_v12 = vpop.xlane.xlu1 %94  ;;  %v35_v13 = vsub.f32 %v24_v4, %v34_v11 }
  0xa0   :  { %v96_v14 = vsub.f32 %v24_v4, %v95_v12 }
  0xa1   :  { %v36_v15 = vsel %vm28_vm3, %v35_v13, 0.0 }
  0xa2   :  { %v97_v16 = vsel %vm271_vm4, %v96_v14, 0.0  ;;  %v37_v17 = vmul.f32 1.442695, %v36_v15  ;;  %v64_v19 = vpop.xlane.xlu0 %63 }
  0xa3   :  { %v98_v18 = vmul.f32 1.442695, %v97_v16  ;;  %v65_v20 = vsub.f32 %v24_v4, %v64_v19 }
  0xa4   :  { %154 = vpow2.f32 %v37_v17 }
  0xa5   :  { %156 = vpow2.f32 %v98_v18  ;;  %v66_v21 = vsel %vm276_vm7, %v65_v20, 0.0 }
  0xa6   :  { %v67_v22 = vmul.f32 1.442695, %v66_v21 }
  0xa8   :  { %158 = vpow2.f32 %v67_v22 }
  0xb1   :  { %v155_v23 = vpop.eup %154 }
  0xb2   :  { %v157_v24 = vpop.eup %156  ;;  %v39_v25 = vsel %vm28_vm3, %v155_v23, 0.0 }
  0xb3   :  { %v40_v26 = vsel %vm31_vm6, %v39_v25, 0.0  ;;  %v100_v27 = vsel %vm271_vm4, %v157_v24, 0.0 }
  0xb4   :  { %41 = vadd.xlane.f32.xlu1 %v40_v26  ;;  %v101_v29 = vsel %vm31_vm6, %v100_v27, 0.0 }
  0xb5   :  { %v159_v28 = vpop.eup %158 }
  0xb6   :  { %v69_v30 = vsel %vm276_vm7, %v159_v28, 0.0 }
  0xb7   :  { %v70_v31 = vsel %vm31_vm6, %v69_v30, 0.0 }
  0xb8   :  { %102 = vadd.xlane.f32.xlu1 %v101_v29  ;;  %71 = vadd.xlane.f32.xlu0 %v70_v31 }
 0x13d   :  { %v42_v32 = vpop.xlane.xlu1 %41 }
 0x13e   :  { %160 = vrcp.f32 %v42_v32 }
 0x141   :  { %v103_v33 = vpop.xlane.xlu1 %102  ;;  %v72_v34 = vpop.xlane.xlu0 %71 }
 0x142   :  { %162 = vrcp.f32 %v103_v33 }
 0x143   :  { %164 = vrcp.f32 %v72_v34 }
 0x14b   :  { %v161_v35 = vpop.eup %160 }
 0x14c   :  { %v44_v36 = vmul.f32 %v161_v35, %v39_v25 }
 0x14e   :  { %v45_v37 = vmax.f32 %v44_v36, 1e-08 }
 0x14f   :  { %v163_v38 = vpop.eup %162 }
 0x150   :  { %v165_v39 = vpop.eup %164  ;;  %v46_v40 = vmin.f32 %v45_v37, 1.0  ;;  %v105_v41 = vmul.f32 %v163_v38, %v100_v27 }
 0x151   :  { %v74_v42 = vmul.f32 %v165_v39, %v69_v30 }
 0x152   :  { %v47_v43 = vsel %vm28_vm3, %v46_v40, 0.0  ;;  %v106_v44 = vmax.f32 %v105_v41, 1e-08 }
 0x153   :  { %v48_v45 = vsel %vm31_vm6, %v47_v43, 0.0  ;;  %v75_v46 = vmax.f32 %v74_v42, 1e-08 }
 0x154   :  { %49 = vadd.xlane.f32.xlu0 %v48_v45  ;;  %v107_v47 = vmin.f32 %v106_v44, 1.0 }
 0x155   :  { %v76_v48 = vmin.f32 %v75_v46, 1.0 }
 0x156   :  { %v108_v49 = vsel %vm271_vm4, %v107_v47, 0.0 }
 0x157   :  { %v110_v50 = vsel %vm31_vm6, %v108_v49, 0.0  ;;  %v77_v51 = vsel %vm276_vm7, %v76_v48, 0.0  ;;  %v78_v52 = vsel %vm276_vm7, %v76_v48, %v47_v43 }
 0x158   :  { %111 = vadd.xlane.f32.xlu0 %v110_v50  ;;  %v79_v53 = vsel %vm31_vm6, %v77_v51, 0.0  ;;  %v109_v54 = vsel %vm271_vm4, %v107_v47, %v78_v52 }
 0x159   :  { %80 = vadd.xlane.f32.xlu1 %v79_v53  ;;  %120 = vst.msk [vmem:[#allocation5] sm:$0xf] %vm31_vm6, %v109_v54 }
 0x15a   :  { %209 = shalt.err (!%p206_p9)
}
 0x15b   :  { %131 = dma.vmem_to_hbm [thread:$0]  %s129_s14, 64, %s332_s1, [#allocation4]  }
 0x15c   :  { %s246_s1 = smov [#allocation6]  }
 0x15d   :  { %s138_s18 = sshll.u32 %s246_s1, 4  ;;  %s139_s18 = int_to_ptr.vmem [resolvable:$true] %s138_s18 }
 0x15e   :  { %s218_s19 = scalar_lea.vmem %s139_s18, 64  ;;  %p223_p11 = scmp.lt.s32.totalorder %s139_s18, %s139_s18 }
 0x15f   :  { %p219_p10 = scmp.ne.s32.totalorder %s139_s18, %s218_s19  ;;  %p224_p12 = scmp.lt.s32.totalorder %s218_s19, %s218_s19 }
 0x161   :  { %p225_p13 = por %p224_p12, %p223_p11 }
 0x163   :  { %p226_p0 = pnand %p225_p13, %p219_p10 }
 0x1dd   :  { %v50_v55 = vpop.xlane.xlu0 %49 }
 0x1de   :  { %166 = vrcp.f32 %v50_v55 }
 0x1e1   :  { %v112_v56 = vpop.xlane.xlu0 %111 }
 0x1e2   :  { %v81_v57 = vpop.xlane.xlu1 %80  ;;  %168 = vrcp.f32 %v112_v56 }
 0x1e3   :  { %170 = vrcp.f32 %v81_v57 }
 0x1eb   :  { %v167_v58 = vpop.eup %166 }
 0x1ec   :  { %v52_v59 = vmul.f32 %v167_v58, %v47_v43 }
 0x1ee   :  { %v53_v60 = vmax.f32 %v52_v59, 1.1920929e-07 }
 0x1ef   :  { %v169_v61 = vpop.eup %168 }
 0x1f0   :  { %v171_v62 = vpop.eup %170  ;;  %v54_v63 = vmin.f32 %v53_v60, 0.9999999  ;;  %v114_v0 = vmul.f32 %v169_v61, %v108_v49 }
 0x1f1   :  { %v83_v4 = vmul.f32 %v171_v62, %v77_v51 }
 0x1f2   :  { %172 = vlog2.f32 %v54_v63  ;;  %v115_v5 = vmax.f32 %v114_v0, 1.1920929e-07 }
 0x1f3   :  { %v84_v6 = vmax.f32 %v83_v4, 1.1920929e-07 }
 0x1f4   :  { %v116_v7 = vmin.f32 %v115_v5, 0.9999999 }
 0x1f5   :  { %v85_v8 = vmin.f32 %v84_v6, 0.9999999 }
 0x1f6   :  { %174 = vlog2.f32 %v116_v7 }
 0x1f7   :  { %176 = vlog2.f32 %v85_v8 }
 0x1ff   :  { %v173_v9 = vpop.eup %172 }
 0x200   :  { %v56_v10 = vmul.f32 0.6931472, %v173_v9 }
 0x202   :  { %v57_v15 = vsel %vm28_vm3, %v56_v10, 0.0 }
 0x203   :  { %v175_v11 = vpop.eup %174 }
 0x204   :  { %v177_v12 = vpop.eup %176  ;;  %v118_v13 = vmul.f32 0.6931472, %v175_v11 }
 0x205   :  { %v87_v14 = vmul.f32 0.6931472, %v177_v12 }
 0x207   :  { %v88_v16 = vsel %vm276_vm7, %v87_v14, %v57_v15 }
 0x208   :  { %v119_v17 = vsel %vm271_vm4, %v118_v13, %v88_v16 }
 0x209   :  { %121 = vst.msk [vmem:[#allocation6] sm:$0xf] %vm31_vm6, %v119_v17 }
 0x20a   :  { %229 = shalt.err (!%p226_p0)
}
 0x20b   :  { %141 = dma.vmem_to_hbm [thread:$0]  %s139_s18, 64, %s333_s2, [#allocation7]  }
 0x20c   :  { %240 = dma.done.wait [#allocation4], 64  }
 0x20d   :  { %241 = vsyncadd [#allocation4], 4294967232 }
 0x20e   :  { %242 = dma.done.wait [#allocation7], 64  }
 0x20f   :  { %243 = vsyncadd [#allocation7], 4294967232 }
 0x210   :  { %148 = vsyncpa [#allocation3], 1 }
 0x211   :  { %149 = vsyncpa [#allocation4], 1 }
 0x212   :  { %150 = vsyncpa [#allocation7], 1 }

</bundles_post_ra>
